<compile_context>
chip_gen: v7x
topology: tpu7x:2x2x1
jax: 0.10.0
libtpu: 0.0.40
codegen_flags: <defaults>
</compile_context>

<pallas_src>
import functools
import math

import numpy as np
import jax
import jax.numpy as jnp
from jax import lax
from jax.experimental import pallas as pl
from jax.experimental.pallas import tpu as pltpu


# ------------------------------- Pallas kernel -------------------------------

def _gconv_fused_kernel(inb_ref, xp_ref, wg_ref, wrows_ref, o_ref,
                        *, block_num, C, Cout, HW):
    """One image per grid step.

    inb_ref   : (1, 9, HW)   int32  shifted block indices per 3x3 offset (-1 = padding)
    xp_ref    : (1, 9*C, HW) f32    im2col of the (zero-padded) input, lane-major
    wg_ref    : (C, C)       f32    graph weight W
    wrows_ref : (9*C, Cout)  f32    conv weights, row = (dy*3+dx)*C + ci
    o_ref     : (1, Cout, HW) f32   conv output (channel-first, flattened spatial)
    """
    K = block_num
    f32 = jnp.float32
    ct_last = (((1,), (1,)), ((), ()))    # contract last dim of both: A @ B^T
    ct_first = (((0,), (0,)), ((), ()))   # contract first dim of both: A^T @ B

    xp = xp_ref[0]                        # (9*C, HW)
    wg = wg_ref[...]                      # (C, C)
    wrows = wrows_ref[...]                # (9*C, Cout)

    iota_k = lax.broadcasted_iota(jnp.int32, (K, HW), 0)
    # One-hot block membership for each of the 9 conv offsets; -1 (padding) -> all-zero col.
    onehots = [
        (iota_k == inb_ref[0, o:o + 1, :]).astype(f32) for o in range(9)
    ]
    oh_c = onehots[4]                     # center offset == the original block assignment

    # ---- per-block means (scatter-mean expressed as a one-hot matmul) ----
    x_c = xp[4 * C:5 * C, :]                                              # (C, HW) = x
    sums = lax.dot_general(oh_c, x_c, ct_last,
                           preferred_element_type=f32)                    # (K, C)
    counts = jnp.sum(oh_c, axis=1, keepdims=True)                         # (K, 1)
    means = sums / (counts + (counts == 0).astype(f32))                   # (K, C)

    # ---- adjacency: adj[i,j] = exp(-(m_j - m_i)^T (W W^T) (m_j - m_i)) ----
    Mg = lax.dot_general(wg, wg, ct_last, preferred_element_type=f32)     # W @ W^T (C, C)
    Y = jnp.dot(means, Mg, preferred_element_type=f32)                    # (K, C)
    G = lax.dot_general(Y, means, ct_last, preferred_element_type=f32)    # G[i,j]=m_i^T M m_j
    Gt = lax.dot_general(means, Y, ct_last, preferred_element_type=f32)   # Gt[i,j]=G[j,i]
    eye_k = (lax.broadcasted_iota(jnp.int32, (K, K), 0)
             == lax.broadcasted_iota(jnp.int32, (K, K), 1)).astype(f32)
    diag_col = jnp.sum(G * eye_k, axis=1, keepdims=True)                  # (K, 1): G[i,i]
    diag_row = jnp.sum(G * eye_k, axis=0, keepdims=True)                  # (1, K): G[j,j]
    adjq = diag_col + diag_row - G - Gt                                   # (m_j-m_i)^T M (m_j-m_i)
    adj = jnp.exp(-adjq)
    # adj_mask is None in this configuration (would be `adj = adj * mask_ref[...]` here).

    # ---- neighbor aggregation: agg[r] = sum_{k != r} adj[r,k] * means[k] ----
    agg = jnp.dot(adj * (1.0 - eye_k), means, preferred_element_type=f32)  # (K, C)

    # ---- 3x3 conv of (x + per-pixel block constant), by linearity of the bias-free conv ----
    acc = lax.dot_general(wrows, xp, ct_first,
                          preferred_element_type=f32)                      # (Cout, HW) = conv(x)
    for o in range(9):
        agg_w = jnp.dot(agg, wrows[o * C:(o + 1) * C, :],
                        preferred_element_type=f32)                        # (K, Cout)
        acc = acc + lax.dot_general(agg_w, onehots[o], ct_first,
                                    preferred_element_type=f32)            # (Cout, HW)
    o_ref[0] = acc


# --------------------------------- JAX glue ----------------------------------

def _upsample_nearest(index, H, W):
    # nn.UpsamplingNearest2d(size=(H, W)) for integer upscale factors.
    B, _, h, w = index.shape
    assert H % h == 0 and W % w == 0, "integer nearest-upsample factor expected"
    up = jnp.repeat(jnp.repeat(index[:, 0], H // h, axis=1), W // w, axis=2)
    return up.astype(jnp.int32)                                            # (B, H, W)


def _neighbor_index(idx_up):
    # Shifted block-index maps for the 9 conv offsets; -1 marks zero padding.
    B, H, W = idx_up.shape
    pad = jnp.pad(idx_up, ((0, 0), (1, 1), (1, 1)), constant_values=-1)
    slabs = [pad[:, dy:dy + H, dx:dx + W].reshape(B, 1, H * W)
             for dy in range(3) for dx in range(3)]
    return jnp.concatenate(slabs, axis=1)                                  # (B, 9, HW) int32


def _patches_t(x):
    # im2col for a 3x3 / pad-1 conv, laid out (B, 9*C, HW) so HW is the lane axis.
    B, C, H, W = x.shape
    xpad = jnp.pad(x, ((0, 0), (0, 0), (1, 1), (1, 1)))
    slabs = [xpad[:, :, dy:dy + H, dx:dx + W].reshape(B, C, H * W)
             for dy in range(3) for dx in range(3)]
    return jnp.concatenate(slabs, axis=1)                                  # (B, 9*C, HW)


def graph2d_convolution(x, index, w_graph, w_conv, *, block_num):
    """x: (B, Cin, H, W) f32; index: (B, 1, h, w) int; w_graph: (Cin, Cin);
    w_conv: (Cout, Cin, 3, 3).  Returns (B, Cout, H, W)."""
    B, C, H, W = x.shape
    Cout = w_conv.shape[0]
    HW = H * W

    idx_up = _upsample_nearest(index, H, W)                                # (B, H, W)
    inb = _neighbor_index(idx_up)                                          # (B, 9, HW)
    xp = _patches_t(x.astype(jnp.float32))                                 # (B, 9C, HW)
    wrows = jnp.transpose(w_conv, (2, 3, 1, 0)).reshape(9 * C, Cout)
    wrows = wrows.astype(jnp.float32)

    kernel = functools.partial(_gconv_fused_kernel,
                               block_num=block_num, C=C, Cout=Cout, HW=HW)

    out = pl.pallas_call(
        kernel,
        out_shape=jax.ShapeDtypeStruct((B, Cout, HW), jnp.float32),
        grid=(B,),
        in_specs=[
            pl.BlockSpec((1, 9, HW), lambda b: (b, 0, 0)),
            pl.BlockSpec((1, 9 * C, HW), lambda b: (b, 0, 0)),
            pl.BlockSpec((C, C), lambda b: (0, 0)),
            pl.BlockSpec((9 * C, Cout), lambda b: (0, 0)),
        ],
        out_specs=pl.BlockSpec((1, Cout, HW), lambda b: (b, 0, 0)),
        compiler_params=pltpu.CompilerParams(dimension_semantics=("parallel",)),
    )(inb, xp, w_graph.astype(jnp.float32), wrows)

    return out.reshape(B, Cout, H, W)


# --------------------------- NumPy reference (f64) ---------------------------

def _reference_numpy(x, index, w_graph, w_conv, block_num):
    x = x.astype(np.float64)
    wg = w_graph.astype(np.float64)
    wc = w_conv.astype(np.float64)
    B, C, H, W = x.shape
    K = block_num
    h, w = index.shape[2], index.shape[3]
    src_h = np.floor(np.arange(H) * (h / H)).astype(np.int64)
    src_w = np.floor(np.arange(W) * (w / W)).astype(np.int64)
    idx_up = index[:, 0][:, src_h][:, :, src_w]                            # (B, H, W)
    one_hot = (idx_up[:, None] == np.arange(K)[None, :, None, None]).astype(np.float64)
    counts = one_hot.sum(axis=(2, 3))
    sums = np.einsum('bkhw,bchw->bkc', one_hot, x)
    means = sums / (counts + (counts == 0))[..., None]
    Mm = wg @ wg.T
    diff = means[:, None, :, :] - means[:, :, None, :]                     # [b,i,j] = m_j - m_i
    adjq = np.einsum('bijc,cd,bijd->bij', diff, Mm, diff)
    adj = np.exp(-adjq)
    agg = np.einsum('bik,bkc->bic', adj * (1.0 - np.eye(K)), means)
    add = np.einsum('bkhw,bkc->bchw', one_hot, agg)
    feats = x + add
    fpad = np.pad(feats, ((0, 0), (0, 0), (1, 1), (1, 1)))
    out = np.zeros((B, wc.shape[0], H, W))
    for dy in range(3):
        for dx in range(3):
            out += np.einsum('bchw,oc->bohw',
                             fpad[:, :, dy:dy + H, dx:dx + W], wc[:, :, dy, dx])
    return out


# ----------------------------------- main ------------------------------------

if __name__ == "__main__":
    B, Cin, Cout, H, W, K = 2, 4, 8, 16, 16, 4

    key = jax.random.PRNGKey(0)
    kx, ki, kw, kc = jax.random.split(key, 4)
    x = jax.random.normal(kx, (B, Cin, H, W), jnp.float32)
    index = jax.random.randint(ki, (B, 1, H // 2, W // 2), 0, K, dtype=jnp.int32)

    stdv = 1.0 / math.sqrt(Cin)                      # nn.Parameter init in the module
    w_graph = jax.random.uniform(kw, (Cin, Cin), jnp.float32, -stdv, stdv)
    bound = 1.0 / math.sqrt(Cin * 9)                 # Conv2d default-ish init, bias=False
    w_conv = jax.random.uniform(kc, (Cout, Cin, 3, 3), jnp.float32, -bound, bound)

    fwd = jax.jit(functools.partial(graph2d_convolution, block_num=K))
    out = fwd(x, index, w_graph, w_conv)
    jax.block_until_ready(out)
    assert out.shape == (B, Cout, H, W)

    ref = _reference_numpy(np.asarray(x), np.asarray(index),
                           np.asarray(w_graph), np.asarray(w_conv), K)
    # Loose tolerance: TPU MXU default-precision f32 matmuls use bf16 passes.
    np.testing.assert_allclose(np.asarray(out), ref, rtol=2e-2, atol=2e-2)

    print("KERNEL_OK")
</pallas_src>

<mosaic_0001>
module attributes {stable_mosaic.version = 11 : i64} {
  func.func @_gconv_fused_kernel(%arg0: i32, %arg1: memref<1x9x256xi32, #tpu.memory_space<vmem>>, %arg2: memref<1x36x256xf32, #tpu.memory_space<vmem>>, %arg3: memref<4x4xf32, #tpu.memory_space<vmem>>, %arg4: memref<36x8xf32, #tpu.memory_space<vmem>>, %arg5: memref<1x8x256xf32, #tpu.memory_space<vmem>>) attributes {dimension_semantics = [#tpu.dimension_semantics<parallel>], iteration_bounds = array<i64: 2>, scalar_prefetch = 0 : i64, scratch_operands = 0 : i64, tpu.core_type = #tpu.core_type<tc>, window_params = [{transform_indices = @transform_0, window_bounds = array<i64: 1, 9, 256>}, {transform_indices = @transform_1, window_bounds = array<i64: 1, 36, 256>}, {pipeline_mode = #tpu.pipeline_mode<synchronous>, transform_indices = @transform_2, window_bounds = array<i64: 4, 4>}, {pipeline_mode = #tpu.pipeline_mode<synchronous>, transform_indices = @transform_3, window_bounds = array<i64: 36, 8>}, {transform_indices = @transform_4, window_bounds = array<i64: 1, 8, 256>}]} {
    %c0 = arith.constant 0 : index
    %c0_0 = arith.constant 0 : index
    %c0_1 = arith.constant 0 : index
    %0 = vector.load %arg2[%c0, %c0_0, %c0_1] : memref<1x36x256xf32, #tpu.memory_space<vmem>>, vector<1x36x256xf32>
    %1 = vector.shape_cast %0 : vector<1x36x256xf32> to vector<36x256xf32>
    %c0_2 = arith.constant 0 : index
    %c0_3 = arith.constant 0 : index
    %2 = vector.load %arg3[%c0_2, %c0_3] : memref<4x4xf32, #tpu.memory_space<vmem>>, vector<4x4xf32>
    %c0_4 = arith.constant 0 : index
    %c0_5 = arith.constant 0 : index
    %3 = vector.load %arg4[%c0_4, %c0_5] : memref<36x8xf32, #tpu.memory_space<vmem>>, vector<36x8xf32>
    %4 = tpu.iota {dimensions = array<i32: 0>} : vector<4x256xi32>
    %c0_6 = arith.constant 0 : index
    %c0_7 = arith.constant 0 : index
    %c0_8 = arith.constant 0 : index
    %5 = vector.load %arg1[%c0_6, %c0_7, %c0_8] : memref<1x9x256xi32, #tpu.memory_space<vmem>>, vector<1x1x256xi32>
    %6 = vector.shape_cast %5 : vector<1x1x256xi32> to vector<1x256xi32>
    %7 = vector.broadcast %6 : vector<1x256xi32> to vector<4x256xi32>
    %8 = arith.cmpi eq, %4, %7 : vector<4x256xi32>
    %9 = arith.extui %8 : vector<4x256xi1> to vector<4x256xi32>
    %10 = arith.sitofp %9 : vector<4x256xi32> to vector<4x256xf32>
    %c0_9 = arith.constant 0 : index
    %c1 = arith.constant 1 : index
    %c0_10 = arith.constant 0 : index
    %11 = vector.load %arg1[%c0_9, %c1, %c0_10] : memref<1x9x256xi32, #tpu.memory_space<vmem>>, vector<1x1x256xi32>
    %12 = vector.shape_cast %11 : vector<1x1x256xi32> to vector<1x256xi32>
    %13 = vector.broadcast %12 : vector<1x256xi32> to vector<4x256xi32>
    %14 = arith.cmpi eq, %4, %13 : vector<4x256xi32>
    %15 = arith.extui %14 : vector<4x256xi1> to vector<4x256xi32>
    %16 = arith.sitofp %15 : vector<4x256xi32> to vector<4x256xf32>
    %c0_11 = arith.constant 0 : index
    %c2 = arith.constant 2 : index
    %c0_12 = arith.constant 0 : index
    %17 = vector.load %arg1[%c0_11, %c2, %c0_12] : memref<1x9x256xi32, #tpu.memory_space<vmem>>, vector<1x1x256xi32>
    %18 = vector.shape_cast %17 : vector<1x1x256xi32> to vector<1x256xi32>
    %19 = vector.broadcast %18 : vector<1x256xi32> to vector<4x256xi32>
    %20 = arith.cmpi eq, %4, %19 : vector<4x256xi32>
    %21 = arith.extui %20 : vector<4x256xi1> to vector<4x256xi32>
    %22 = arith.sitofp %21 : vector<4x256xi32> to vector<4x256xf32>
    %c0_13 = arith.constant 0 : index
    %c3 = arith.constant 3 : index
    %c0_14 = arith.constant 0 : index
    %23 = vector.load %arg1[%c0_13, %c3, %c0_14] : memref<1x9x256xi32, #tpu.memory_space<vmem>>, vector<1x1x256xi32>
    %24 = vector.shape_cast %23 : vector<1x1x256xi32> to vector<1x256xi32>
    %25 = vector.broadcast %24 : vector<1x256xi32> to vector<4x256xi32>
    %26 = arith.cmpi eq, %4, %25 : vector<4x256xi32>
    %27 = arith.extui %26 : vector<4x256xi1> to vector<4x256xi32>
    %28 = arith.sitofp %27 : vector<4x256xi32> to vector<4x256xf32>
    %c0_15 = arith.constant 0 : index
    %c4 = arith.constant 4 : index
    %c0_16 = arith.constant 0 : index
    %29 = vector.load %arg1[%c0_15, %c4, %c0_16] : memref<1x9x256xi32, #tpu.memory_space<vmem>>, vector<1x1x256xi32>
    %30 = vector.shape_cast %29 : vector<1x1x256xi32> to vector<1x256xi32>
    %31 = vector.broadcast %30 : vector<1x256xi32> to vector<4x256xi32>
    %32 = arith.cmpi eq, %4, %31 : vector<4x256xi32>
    %33 = arith.extui %32 : vector<4x256xi1> to vector<4x256xi32>
    %34 = arith.sitofp %33 : vector<4x256xi32> to vector<4x256xf32>
    %c0_17 = arith.constant 0 : index
    %c5 = arith.constant 5 : index
    %c0_18 = arith.constant 0 : index
    %35 = vector.load %arg1[%c0_17, %c5, %c0_18] : memref<1x9x256xi32, #tpu.memory_space<vmem>>, vector<1x1x256xi32>
    %36 = vector.shape_cast %35 : vector<1x1x256xi32> to vector<1x256xi32>
    %37 = vector.broadcast %36 : vector<1x256xi32> to vector<4x256xi32>
    %38 = arith.cmpi eq, %4, %37 : vector<4x256xi32>
    %39 = arith.extui %38 : vector<4x256xi1> to vector<4x256xi32>
    %40 = arith.sitofp %39 : vector<4x256xi32> to vector<4x256xf32>
    %c0_19 = arith.constant 0 : index
    %c6 = arith.constant 6 : index
    %c0_20 = arith.constant 0 : index
    %41 = vector.load %arg1[%c0_19, %c6, %c0_20] : memref<1x9x256xi32, #tpu.memory_space<vmem>>, vector<1x1x256xi32>
    %42 = vector.shape_cast %41 : vector<1x1x256xi32> to vector<1x256xi32>
    %43 = vector.broadcast %42 : vector<1x256xi32> to vector<4x256xi32>
    %44 = arith.cmpi eq, %4, %43 : vector<4x256xi32>
    %45 = arith.extui %44 : vector<4x256xi1> to vector<4x256xi32>
    %46 = arith.sitofp %45 : vector<4x256xi32> to vector<4x256xf32>
    %c0_21 = arith.constant 0 : index
    %c7 = arith.constant 7 : index
    %c0_22 = arith.constant 0 : index
    %47 = vector.load %arg1[%c0_21, %c7, %c0_22] : memref<1x9x256xi32, #tpu.memory_space<vmem>>, vector<1x1x256xi32>
    %48 = vector.shape_cast %47 : vector<1x1x256xi32> to vector<1x256xi32>
    %49 = vector.broadcast %48 : vector<1x256xi32> to vector<4x256xi32>
    %50 = arith.cmpi eq, %4, %49 : vector<4x256xi32>
    %51 = arith.extui %50 : vector<4x256xi1> to vector<4x256xi32>
    %52 = arith.sitofp %51 : vector<4x256xi32> to vector<4x256xf32>
    %c0_23 = arith.constant 0 : index
    %c8 = arith.constant 8 : index
    %c0_24 = arith.constant 0 : index
    %53 = vector.load %arg1[%c0_23, %c8, %c0_24] : memref<1x9x256xi32, #tpu.memory_space<vmem>>, vector<1x1x256xi32>
    %54 = vector.shape_cast %53 : vector<1x1x256xi32> to vector<1x256xi32>
    %55 = vector.broadcast %54 : vector<1x256xi32> to vector<4x256xi32>
    %56 = arith.cmpi eq, %4, %55 : vector<4x256xi32>
    %57 = arith.extui %56 : vector<4x256xi1> to vector<4x256xi32>
    %58 = arith.sitofp %57 : vector<4x256xi32> to vector<4x256xf32>
    %59 = vector.extract_strided_slice %1 {offsets = [16, 0], sizes = [4, 256], strides = [1, 1]} : vector<36x256xf32> to vector<4x256xf32>
    %cst = arith.constant dense<0.000000e+00> : vector<4x4xf32>
    %60 = tpu.matmul %34, %59, %cst {dimension_numbers = #tpu.dot_dimension_numbers<[1], [1], [0], [0], [0, 0, 1, 0], [], []>} : vector<4x256xf32>, vector<4x256xf32>, vector<4x4xf32> -> vector<4x4xf32>
    %cst_25 = arith.constant dense<0.000000e+00> : vector<4xf32>
    %61 = vector.multi_reduction <add>, %34, %cst_25 [1] : vector<4x256xf32> to vector<4xf32>
    %62 = vector.shape_cast %61 : vector<4xf32> to vector<4x1xf32>
    %cst_26 = arith.constant 0.000000e+00 : f32
    %63 = vector.broadcast %cst_26 : f32 to vector<4x1xf32>
    %64 = arith.cmpf oeq, %62, %63 : vector<4x1xf32>
    %65 = arith.extui %64 : vector<4x1xi1> to vector<4x1xi32>
    %66 = arith.sitofp %65 : vector<4x1xi32> to vector<4x1xf32>
    %67 = arith.addf %62, %66 : vector<4x1xf32>
    %68 = vector.broadcast %67 : vector<4x1xf32> to vector<4x4xf32>
    %69 = arith.divf %60, %68 : vector<4x4xf32>
    %cst_27 = arith.constant dense<0.000000e+00> : vector<4x4xf32>
    %70 = tpu.matmul %2, %2, %cst_27 {dimension_numbers = #tpu.dot_dimension_numbers<[1], [1], [0], [0], [0, 0, 1, 0], [], []>} : vector<4x4xf32>, vector<4x4xf32>, vector<4x4xf32> -> vector<4x4xf32>
    %cst_28 = arith.constant dense<0.000000e+00> : vector<4x4xf32>
    %71 = tpu.matmul %69, %70, %cst_28 {dimension_numbers = #tpu.dot_dimension_numbers<[1], [0], [0], [1], [0, 0, 1, 1], [], []>} : vector<4x4xf32>, vector<4x4xf32>, vector<4x4xf32> -> vector<4x4xf32>
    %cst_29 = arith.constant dense<0.000000e+00> : vector<4x4xf32>
    %72 = tpu.matmul %71, %69, %cst_29 {dimension_numbers = #tpu.dot_dimension_numbers<[1], [1], [0], [0], [0, 0, 1, 0], [], []>} : vector<4x4xf32>, vector<4x4xf32>, vector<4x4xf32> -> vector<4x4xf32>
    %cst_30 = arith.constant dense<0.000000e+00> : vector<4x4xf32>
    %73 = tpu.matmul %69, %71, %cst_30 {dimension_numbers = #tpu.dot_dimension_numbers<[1], [1], [0], [0], [0, 0, 1, 0], [], []>} : vector<4x4xf32>, vector<4x4xf32>, vector<4x4xf32> -> vector<4x4xf32>
    %74 = tpu.iota {dimensions = array<i32: 0>} : vector<4x4xi32>
    %75 = tpu.iota {dimensions = array<i32: 1>} : vector<4x4xi32>
    %76 = arith.cmpi eq, %74, %75 : vector<4x4xi32>
    %77 = arith.extui %76 : vector<4x4xi1> to vector<4x4xi32>
    %78 = arith.sitofp %77 : vector<4x4xi32> to vector<4x4xf32>
    %79 = arith.mulf %72, %78 : vector<4x4xf32>
    %cst_31 = arith.constant dense<0.000000e+00> : vector<4xf32>
    %80 = vector.multi_reduction <add>, %79, %cst_31 [1] : vector<4x4xf32> to vector<4xf32>
    %81 = vector.shape_cast %80 : vector<4xf32> to vector<4x1xf32>
    %82 = arith.mulf %72, %78 : vector<4x4xf32>
    %cst_32 = arith.constant dense<0.000000e+00> : vector<4xf32>
    %83 = vector.multi_reduction <add>, %82, %cst_32 [0] : vector<4x4xf32> to vector<4xf32>
    %84 = vector.shape_cast %83 : vector<4xf32> to vector<1x4xf32>
    %85 = vector.broadcast %81 : vector<4x1xf32> to vector<4x4xf32>
    %86 = vector.broadcast %84 : vector<1x4xf32> to vector<4x4xf32>
    %87 = arith.addf %85, %86 : vector<4x4xf32>
    %88 = arith.subf %87, %72 : vector<4x4xf32>
    %89 = arith.subf %88, %73 : vector<4x4xf32>
    %cst_33 = arith.constant 0.000000e+00 : f32
    %90 = vector.broadcast %cst_33 : f32 to vector<4x4xf32>
    %91 = arith.subf %90, %89 : vector<4x4xf32>
    %92 = math.exp %91 : vector<4x4xf32>
    %cst_34 = arith.constant 1.000000e+00 : f32
    %93 = vector.broadcast %cst_34 : f32 to vector<4x4xf32>
    %94 = arith.subf %93, %78 : vector<4x4xf32>
    %95 = arith.mulf %92, %94 : vector<4x4xf32>
    %cst_35 = arith.constant dense<0.000000e+00> : vector<4x4xf32>
    %96 = tpu.matmul %95, %69, %cst_35 {dimension_numbers = #tpu.dot_dimension_numbers<[1], [0], [0], [1], [0, 0, 1, 1], [], []>} : vector<4x4xf32>, vector<4x4xf32>, vector<4x4xf32> -> vector<4x4xf32>
    %cst_36 = arith.constant dense<0.000000e+00> : vector<8x256xf32>
    %97 = tpu.matmul %3, %1, %cst_36 {dimension_numbers = #tpu.dot_dimension_numbers<[0], [0], [1], [1], [0, 1, 1, 1], [], []>} : vector<36x8xf32>, vector<36x256xf32>, vector<8x256xf32> -> vector<8x256xf32>
    %98 = vector.extract_strided_slice %3 {offsets = [0, 0], sizes = [4, 8], strides = [1, 1]} : vector<36x8xf32> to vector<4x8xf32>
    %cst_37 = arith.constant dense<0.000000e+00> : vector<4x8xf32>
    %99 = tpu.matmul %96, %98, %cst_37 {dimension_numbers = #tpu.dot_dimension_numbers<[1], [0], [0], [1], [0, 0, 1, 1], [], []>} : vector<4x4xf32>, vector<4x8xf32>, vector<4x8xf32> -> vector<4x8xf32>
    %cst_38 = arith.constant dense<0.000000e+00> : vector<8x256xf32>
    %100 = tpu.matmul %99, %10, %cst_38 {dimension_numbers = #tpu.dot_dimension_numbers<[0], [0], [1], [1], [0, 1, 1, 1], [], []>} : vector<4x8xf32>, vector<4x256xf32>, vector<8x256xf32> -> vector<8x256xf32>
    %101 = arith.addf %97, %100 : vector<8x256xf32>
    %102 = vector.extract_strided_slice %3 {offsets = [4, 0], sizes = [4, 8], strides = [1, 1]} : vector<36x8xf32> to vector<4x8xf32>
    %cst_39 = arith.constant dense<0.000000e+00> : vector<4x8xf32>
    %103 = tpu.matmul %96, %102, %cst_39 {dimension_numbers = #tpu.dot_dimension_numbers<[1], [0], [0], [1], [0, 0, 1, 1], [], []>} : vector<4x4xf32>, vector<4x8xf32>, vector<4x8xf32> -> vector<4x8xf32>
    %cst_40 = arith.constant dense<0.000000e+00> : vector<8x256xf32>
    %104 = tpu.matmul %103, %16, %cst_40 {dimension_numbers = #tpu.dot_dimension_numbers<[0], [0], [1], [1], [0, 1, 1, 1], [], []>} : vector<4x8xf32>, vector<4x256xf32>, vector<8x256xf32> -> vector<8x256xf32>
    %105 = arith.addf %101, %104 : vector<8x256xf32>
    %106 = vector.extract_strided_slice %3 {offsets = [8, 0], sizes = [4, 8], strides = [1, 1]} : vector<36x8xf32> to vector<4x8xf32>
    %cst_41 = arith.constant dense<0.000000e+00> : vector<4x8xf32>
    %107 = tpu.matmul %96, %106, %cst_41 {dimension_numbers = #tpu.dot_dimension_numbers<[1], [0], [0], [1], [0, 0, 1, 1], [], []>} : vector<4x4xf32>, vector<4x8xf32>, vector<4x8xf32> -> vector<4x8xf32>
    %cst_42 = arith.constant dense<0.000000e+00> : vector<8x256xf32>
    %108 = tpu.matmul %107, %22, %cst_42 {dimension_numbers = #tpu.dot_dimension_numbers<[0], [0], [1], [1], [0, 1, 1, 1], [], []>} : vector<4x8xf32>, vector<4x256xf32>, vector<8x256xf32> -> vector<8x256xf32>
    %109 = arith.addf %105, %108 : vector<8x256xf32>
    %110 = vector.extract_strided_slice %3 {offsets = [12, 0], sizes = [4, 8], strides = [1, 1]} : vector<36x8xf32> to vector<4x8xf32>
    %cst_43 = arith.constant dense<0.000000e+00> : vector<4x8xf32>
    %111 = tpu.matmul %96, %110, %cst_43 {dimension_numbers = #tpu.dot_dimension_numbers<[1], [0], [0], [1], [0, 0, 1, 1], [], []>} : vector<4x4xf32>, vector<4x8xf32>, vector<4x8xf32> -> vector<4x8xf32>
    %cst_44 = arith.constant dense<0.000000e+00> : vector<8x256xf32>
    %112 = tpu.matmul %111, %28, %cst_44 {dimension_numbers = #tpu.dot_dimension_numbers<[0], [0], [1], [1], [0, 1, 1, 1], [], []>} : vector<4x8xf32>, vector<4x256xf32>, vector<8x256xf32> -> vector<8x256xf32>
    %113 = arith.addf %109, %112 : vector<8x256xf32>
    %114 = vector.extract_strided_slice %3 {offsets = [16, 0], sizes = [4, 8], strides = [1, 1]} : vector<36x8xf32> to vector<4x8xf32>
    %cst_45 = arith.constant dense<0.000000e+00> : vector<4x8xf32>
    %115 = tpu.matmul %96, %114, %cst_45 {dimension_numbers = #tpu.dot_dimension_numbers<[1], [0], [0], [1], [0, 0, 1, 1], [], []>} : vector<4x4xf32>, vector<4x8xf32>, vector<4x8xf32> -> vector<4x8xf32>
    %cst_46 = arith.constant dense<0.000000e+00> : vector<8x256xf32>
    %116 = tpu.matmul %115, %34, %cst_46 {dimension_numbers = #tpu.dot_dimension_numbers<[0], [0], [1], [1], [0, 1, 1, 1], [], []>} : vector<4x8xf32>, vector<4x256xf32>, vector<8x256xf32> -> vector<8x256xf32>
    %117 = arith.addf %113, %116 : vector<8x256xf32>
    %118 = vector.extract_strided_slice %3 {offsets = [20, 0], sizes = [4, 8], strides = [1, 1]} : vector<36x8xf32> to vector<4x8xf32>
    %cst_47 = arith.constant dense<0.000000e+00> : vector<4x8xf32>
    %119 = tpu.matmul %96, %118, %cst_47 {dimension_numbers = #tpu.dot_dimension_numbers<[1], [0], [0], [1], [0, 0, 1, 1], [], []>} : vector<4x4xf32>, vector<4x8xf32>, vector<4x8xf32> -> vector<4x8xf32>
    %cst_48 = arith.constant dense<0.000000e+00> : vector<8x256xf32>
    %120 = tpu.matmul %119, %40, %cst_48 {dimension_numbers = #tpu.dot_dimension_numbers<[0], [0], [1], [1], [0, 1, 1, 1], [], []>} : vector<4x8xf32>, vector<4x256xf32>, vector<8x256xf32> -> vector<8x256xf32>
    %121 = arith.addf %117, %120 : vector<8x256xf32>
    %122 = vector.extract_strided_slice %3 {offsets = [24, 0], sizes = [4, 8], strides = [1, 1]} : vector<36x8xf32> to vector<4x8xf32>
    %cst_49 = arith.constant dense<0.000000e+00> : vector<4x8xf32>
    %123 = tpu.matmul %96, %122, %cst_49 {dimension_numbers = #tpu.dot_dimension_numbers<[1], [0], [0], [1], [0, 0, 1, 1], [], []>} : vector<4x4xf32>, vector<4x8xf32>, vector<4x8xf32> -> vector<4x8xf32>
    %cst_50 = arith.constant dense<0.000000e+00> : vector<8x256xf32>
    %124 = tpu.matmul %123, %46, %cst_50 {dimension_numbers = #tpu.dot_dimension_numbers<[0], [0], [1], [1], [0, 1, 1, 1], [], []>} : vector<4x8xf32>, vector<4x256xf32>, vector<8x256xf32> -> vector<8x256xf32>
    %125 = arith.addf %121, %124 : vector<8x256xf32>
    %126 = vector.extract_strided_slice %3 {offsets = [28, 0], sizes = [4, 8], strides = [1, 1]} : vector<36x8xf32> to vector<4x8xf32>
    %cst_51 = arith.constant dense<0.000000e+00> : vector<4x8xf32>
    %127 = tpu.matmul %96, %126, %cst_51 {dimension_numbers = #tpu.dot_dimension_numbers<[1], [0], [0], [1], [0, 0, 1, 1], [], []>} : vector<4x4xf32>, vector<4x8xf32>, vector<4x8xf32> -> vector<4x8xf32>
    %cst_52 = arith.constant dense<0.000000e+00> : vector<8x256xf32>
    %128 = tpu.matmul %127, %52, %cst_52 {dimension_numbers = #tpu.dot_dimension_numbers<[0], [0], [1], [1], [0, 1, 1, 1], [], []>} : vector<4x8xf32>, vector<4x256xf32>, vector<8x256xf32> -> vector<8x256xf32>
    %129 = arith.addf %125, %128 : vector<8x256xf32>
    %130 = vector.extract_strided_slice %3 {offsets = [32, 0], sizes = [4, 8], strides = [1, 1]} : vector<36x8xf32> to vector<4x8xf32>
    %cst_53 = arith.constant dense<0.000000e+00> : vector<4x8xf32>
    %131 = tpu.matmul %96, %130, %cst_53 {dimension_numbers = #tpu.dot_dimension_numbers<[1], [0], [0], [1], [0, 0, 1, 1], [], []>} : vector<4x4xf32>, vector<4x8xf32>, vector<4x8xf32> -> vector<4x8xf32>
    %cst_54 = arith.constant dense<0.000000e+00> : vector<8x256xf32>
    %132 = tpu.matmul %131, %58, %cst_54 {dimension_numbers = #tpu.dot_dimension_numbers<[0], [0], [1], [1], [0, 1, 1, 1], [], []>} : vector<4x8xf32>, vector<4x256xf32>, vector<8x256xf32> -> vector<8x256xf32>
    %133 = arith.addf %129, %132 : vector<8x256xf32>
    %c0_55 = arith.constant 0 : index
    %c0_56 = arith.constant 0 : index
    %c0_57 = arith.constant 0 : index
    %134 = vector.load %arg5[%c0_55, %c0_56, %c0_57] : memref<1x8x256xf32, #tpu.memory_space<vmem>>, vector<1x8x256xf32>
    %135 = vector.shape_cast %134 : vector<1x8x256xf32> to vector<8x256xf32>
    %136 = vector.shape_cast %133 : vector<8x256xf32> to vector<1x8x256xf32>
    tpu.vector_store %arg5[%c0_55, %c0_56, %c0_57], %136 {strides = array<i32>} : memref<1x8x256xf32, #tpu.memory_space<vmem>>, vector<1x8x256xf32>,
    return
  }
  func.func @transform_0(%arg0: i32) -> (i32, i32, i32) {
    %c0_i32 = arith.constant 0 : i32
    %c0_i32_0 = arith.constant 0 : i32
    %c0_i32_1 = arith.constant 0 : i32
    return %arg0, %c0_i32, %c0_i32_0 : i32, i32, i32
  }
  func.func @transform_1(%arg0: i32) -> (i32, i32, i32) {
    %c0_i32 = arith.constant 0 : i32
    %c0_i32_0 = arith.constant 0 : i32
    %c0_i32_1 = arith.constant 0 : i32
    return %arg0, %c0_i32, %c0_i32_0 : i32, i32, i32
  }
  func.func @transform_2(%arg0: i32) -> (i32, i32) {
    %c0_i32 = arith.constant 0 : i32
    %c0_i32_0 = arith.constant 0 : i32
    %c0_i32_1 = arith.constant 0 : i32
    return %c0_i32, %c0_i32_0 : i32, i32
  }
  func.func @transform_3(%arg0: i32) -> (i32, i32) {
    %c0_i32 = arith.constant 0 : i32
    %c0_i32_0 = arith.constant 0 : i32
    %c0_i32_1 = arith.constant 0 : i32
    return %c0_i32, %c0_i32_0 : i32, i32
  }
  func.func @transform_4(%arg0: i32) -> (i32, i32, i32) {
    %c0_i32 = arith.constant 0 : i32
    %c0_i32_0 = arith.constant 0 : i32
    %c0_i32_1 = arith.constant 0 : i32
    return %arg0, %c0_i32, %c0_i32_0 : i32, i32, i32
  }
}

</mosaic_0001>

<bundles_post_ra>
// kernel: graph2d_convolution.1
= control target key start
LH: loop header
LB: loop body
LE: loop exit
PB: predicated region body
PF: predicated region fallthrough
CT: control target
= control target key end

     0   :  { %s2997_s15 = smov 0   ;;  %s3257_s0 = inlined_call_operand.vmem [shape: s32[2,9,256], index: 0, kind: input, shape index: {}]   ;;  %s3258_s1 = inlined_call_operand.vmem [shape: f32[2,36,256], index: 1, kind: input, shape index: {}]   ;;  %s3259_s2 = inlined_call_operand.vmem [shape: f32[4,4], index: 2, kind: input, shape index: {}]   ;;  %s3260_s3 = inlined_call_operand.vmem [shape: f32[36,8], index: 3, kind: input, shape index: {}]   ;;  %s3261_s4 = inlined_call_operand.vmem [shape: f32[2,8,256], index: 4, kind: output, shape index: {}]  }
   0x1 LB: > { %s2719_s16 = sadd.s32 4294967295, %s2967_s15   ;;  %p2723_p0 = scmp.ge.s32.totalorder %s2967_s15, 1  ;;  %s2967_s15 = sphi %s2997_s15, %s14_s15  }
   0x2   : > { %p172_p1 = scmp.lt.s32.totalorder %s2967_s15, 3 }
   0x4   : > { %p173_p2 = pnand %p2723_p0, %p172_p1 }
   0x5   : > { %p203_p3 = scmp.lt.s32.totalorder (!%p173_p2), %s2719_s16, 1  ;;  %v234_v0 = vlaneseq (!%p173_p2)  ;;  %v2969_v1 = vmov (!%p173_p2), 0.0   ;;  %vm2970_vm0 = vmmov (!%p173_p2), 0   ;;  %vm449_vm1 = vcmask (!%p173_p2), 1043456   ;;  %v228_v12 = vld [vmem:[%s3259_s2] sm:$0xf] (!%p173_p2) }
   0x6   : > { %176 = sbr.rel (%p173_p2) target bundleno = 1672 (0x688), region = 36  ;;  %2859 = vmatprep.subr.mxu1 (!%p173_p2), %v2969_v1  ;;  %2861 = vmatprep.mubr.msk.f32.mxu1 (!%p173_p2), %vm2970_vm0, %v2969_v1  ;;  %v2971_v11 = vmov (!%p173_p2), 1.0   ;;  %vm461_vm4 = vcmask (!%p173_p2), 31744   ;;  %vm760_vm7 = vcmask (!%p173_p2), 27648   ;;  %v229_v51 = vld [vmem:[%s3260_s3] sm:$0xff] (!%p173_p2)  ;;  %v230_v55 = vld [vmem:[%s3260_s3 + $0x8] sm:$0xff] (!%p173_p2) }
   0x7   : > { %v3009_v2 = vshrl.u32 (!%p173_p2), %v234_v0, 7  ;;  %v755_v28 = vand.u32 (!%p173_p2), 127, %v234_v0  ;;  %v1154_v52 = vrot.slane (!%p173_p2), %v229_v51, 4  ;;  %v1528_v56 = vrot.slane (!%p173_p2), %v230_v55, 4  ;;  %v231_v57 = vld [vmem:[%s3260_s3 + $0x10] sm:$0xff] (!%p173_p2)  ;;  %v232_v59 = vld [vmem:[%s3260_s3 + $0x18] sm:$0xff] (!%p173_p2) }
   0x8   : > { %v1902_v58 = vrot.slane (!%p173_p2), %v231_v57, 4  ;;  %v2276_v60 = vrot.slane (!%p173_p2), %v232_v59, 4  ;;  %v233_v61 = vld [vmem:[%s3260_s3 + $0x20] sm:$0xf] (!%p173_p2)  ;;  %vm1073_vm13 = vcmask (!%p173_p2), 293888  }
   0x9   : > { %v3016_v3 = vsub.s32 (!%p173_p2), 0, %v3009_v2  ;;  %v3019_v4 = vsub.s32 (!%p173_p2), 1, %v3009_v2  ;;  %vm756_vm6 = vcmp.eq.s32.totalorder (!%p173_p2), %v3009_v2, %v755_v28 }
   0xa   : > { %v2766_v29 = vsel (!%p173_p2), %vm756_vm6, 1.0, %v2969_v1 }
   0xb   : > { %v776_v48 = vsub.f32 (!%p173_p2), 1.0, %v2766_v29 }
   0xd   : > { %s3263_s16 = smov (!%p203_p3, %s2719_s16), 1 }
   0xe   : > { %s2945_s17 = smul.u32 80, %s3263_s16  ;;  %s2819_s18 = sshll.u32 %s3263_s16, 5 }
   0xf   : > { %s3024_s21 = scalar_lea.vmem %s3257_s0, %s2819_s18  ;;  %s2820_s11 = sshll.u32 %s3263_s16, 4 }
  0x10   : > { %s3029_s24 = scalar_lea.vmem %s3258_s1, %s2945_s17  ;;  %v2740_v5 = vld [vmem:[%s3024_s21 + $0x4] ss:$8 sm:$0x3]  ;;  %v236_v62 = vld [vmem:[%s3024_s21] ss:$8 sm:$0x3]  ;;  %s217_s14 = scalar_lea.vmem %s3261_s4, %s2820_s11 }
  0x11   : > { %v3033_v6 = vld [vmem:[%s3029_s24 + $0x28] sm:$0xff]  ;;  %v3036_v7 = vld [vmem:[%s3029_s24 + $0x20] sm:$0xff]  ;;  %v304_v8 = vrot.slane %v2740_v5, %v3016_v3  ;;  %v308_v9 = vrot.slane %v2740_v5, %v3019_v4  ;;  %v240_v63 = vrot.slane %v236_v62, %v3016_v3  ;;  %v244_v0 = vrot.slane %v236_v62, %v3019_v4 }
  0x12   : > { %379 = vmatprep.subr.mxu0 %v3033_v6 }
  0x13   : > { %380 = vmatpush1.xpose.msra.mxu0 %v3036_v7  ;;  %vm310_vm2 = vcmp.eq.s32.totalorder %v3009_v2, %v308_v9  ;;  %vm309_vm3 = vcmp.eq.s32.totalorder %v3009_v2, %v304_v8  ;;  %vm246_vm8 = vcmp.eq.s32.totalorder %v3009_v2, %v244_v0  ;;  %vm245_vm9 = vcmp.eq.s32.totalorder %v3009_v2, %v240_v63  ;;  %v219_v9 = vld [vmem:[%s3029_s24 + $0x8] sm:$0xff] }
  0x14   : > { %v3045_v10 = vsel %vm310_vm2, 1.0, %v2969_v1  ;;  %2755 = vmatprep.mubr.msk.f32.mxu0 %vm310_vm2, %v2971_v11  ;;  %2849 = vmatprep.subr.mxu0 %v2969_v1  ;;  %v3052_v13 = vsel %vm309_vm3, 1.0, %v2969_v1  ;;  %v2730_v5 = vsel %vm246_vm8, 1.0, %v2969_v1  ;;  %v2729_v8 = vsel %vm245_vm9, 1.0, %v2969_v1 }
  0x15   : > { %v450_v14 = vsel %vm449_vm1, %v3052_v13, 0.0  ;;  %v451_v15 = vsel %vm449_vm1, %v3045_v10, 0.0 }
  0x16   : > { %2756 = vmatmul.mubr.msk.f32.vlgmr.msra.gmra.mrb[0].mxu0 %vm309_vm3, %v2971_v11  ;;  %v452_v16 = vadd.f32 %v451_v15, %v450_v14  ;;  %v221_v11 = vld [vmem:[%s3029_s24 + $0x18] sm:$0xff] }
  0x17   : > { %2850 = vmatpush3.xpose.msk.msra.mxu0 %vm461_vm4, %v228_v12  ;;  %2851 = vmatprep.mubr.msk.f32.mxu0 %vm2970_vm0, %v2969_v1  ;;  %v2919_v14 = vpack.c.bf16 %v221_v11, %v219_v9 }
  0x18   : > { %453 = vadd.xlane.f32.xlu0 %v452_v16  ;;  %2854 = vmatprep.subr.mxu0 %v2969_v1 }
  0x1a   : > { %2852 = vmatmul.mubr.msk.f32.vlgmr.msra.gmra.mrb[2].mxu0 %vm461_vm4, %v228_v12 }
  0x1b   : > { %2856 = vmatprep.mubr.msk.f32.mxu0 %vm2970_vm0, %v2969_v1 }
  0xa5   : > { %v454_v17 = vpop.xlane.xlu0 %453 }
  0xa6   : > { %vm455_vm5 = vcmp.eq.f32.partialorder %v454_v17, 0.0 }
  0xa7   : > { %v2757_v18 = vsel %vm455_vm5, 1.0, %v2969_v1 }
  0xa8   : > { %v458_v19 = vadd.f32 %v2757_v18, %v454_v17 }
  0xaa   : > { %2957 = vrcp.f32 %v458_v19 }
  0xb4   : > { %v2958_v20 = vpop.eup %2957 }
  0xe9   : > { %v445_v21 = vpop.f32.mrb[0].mxu0 }
  0xea   : > { %v460_v22 = vmul.f32 %v2958_v20, %v445_v21  ;;  %v447_v23 = vpop.f32.mrb[1].mxu0 }
  0xec   : > { %2860 = vmatpush3.xpose.msk.msra.mxu1 %vm461_vm4, %v460_v22 }
  0xed   : > { %v531_v24 = vpop.f32.mrb[2].mxu0  ;;  %2869 = vmatprep.subr.mxu1 %v2969_v1 }
  0xee   : > { %v2853_v25 = vpop.f32.mrb[3].mxu0  ;;  %2855 = vmatpush3.msk.msra.mxu0 %vm449_vm1, %v531_v24 }
  0xef   : > { %2857 = vmatmul.mubr.msk.f32.vlgmr.msra.gmra.mrb[4].mxu0 %vm461_vm4, %v460_v22  ;;  %2864 = vmatprep.subr.mxu0 %v2969_v1 }
  0xf0   : > { %2866 = vmatprep.mubr.msk.f32.mxu0 %vm2970_vm0, %v2969_v1 }
 0x1c2   : > { %v607_v26 = vpop.f32.mrb[4].mxu0 }
 0x1c3   : > { %v2858_v27 = vpop.f32.mrb[5].mxu0  ;;  %2862 = vmatmul.mubr.msk.f32.vlgmr.msra.gmra.mrb[0].mxu1 %vm461_vm4, %v607_v26  ;;  %2865 = vmatpush3.xpose.msk.msra.mxu0 %vm461_vm4, %v607_v26 }
 0x1c4   : > { %2870 = vmatpush3.msk.msra.mxu1 %vm449_vm1, %v460_v22  ;;  %2871 = vmatprep.mubr.msk.f32.mxu1 %vm2970_vm0, %v2969_v1 }
 0x1c5   : > { %2874 = vmatprep.subr.mxu0 %v2969_v1  ;;  %2771 = vmatprep.subr.msk.mxu1 %vm449_vm1, %v2730_v5  ;;  %v2749_v5 = vld [vmem:[%s3024_s21 + $0x7] ss:$8 sm:$0x3] }
 0x1c6   : > { %2867 = vmatmul.mubr.msk.f32.vlgmr.msra.gmra.mrb[6].mxu0 %vm461_vm4, %v460_v22 }
 0x1c7   : > { %2876 = vmatprep.mubr.msk.f32.mxu0 %vm2970_vm0, %v2969_v1  ;;  %2875 = vmatpush3.msk.msra.mxu0 %vm449_vm1, %v229_v51 }
 0x1c8   : > { %2879 = vmatprep.subr.mxu0 %v2969_v1 }
 0x296   : > { %v680_v30 = vpop.f32.mrb[0].mxu1 }
 0x297   : > { %v759_v31 = vmul.f32 %v2766_v29, %v680_v30  ;;  %v2863_v32 = vpop.f32.mrb[1].mxu1 }
 0x298   : > { %v218_v32 = vld [vmem:[%s3029_s24] sm:$0xff] }
 0x299   : > { %v750_v33 = vpop.f32.mrb[6].mxu0  ;;  %v761_v34 = vsel %vm760_vm7, %v759_v31, 0.0 }
 0x29a   : > { %762 = vadd.xlane.f32.xlu0 %v761_v34  ;;  %v2868_v35 = vpop.f32.mrb[7].mxu0  ;;  %v764_v36 = vrot.slane %v761_v34, 4 }
 0x29c   : > { %v765_v37 = vadd.f32 %v764_v36, %v761_v34  ;;  %v225_v34 = vld [vmem:[%s3029_s24 + $0x38] sm:$0xff]  ;;  %v2731_v36 = vld [vmem:[%s3024_s21 + $0x1] ss:$8 sm:$0x3] }
 0x29e   : > { %v766_v38 = vrot.slane %v765_v37, 2 }
 0x2a0   : > { %v767_v39 = vadd.f32 %v766_v38, %v765_v37  ;;  %v2923_v37 = vpack.c.bf16 %v225_v34, %v3033_v6  ;;  %v224_v38 = vld [vmem:[%s3029_s24 + $0x30] sm:$0xff]  ;;  %v227_v6 = vld [vmem:[%s3029_s24 + $0x48] sm:$0xf] }
 0x2a2   : > { %v768_v40 = vrot.slane %v767_v39, 1 }
 0x2a4   : > { %v769_v41 = vadd.f32 %v768_v40, %v767_v39  ;;  %v2734_v40 = vld [vmem:[%s3024_s21 + $0x2] ss:$8 sm:$0x3] }
 0x327   : > { %v763_v42 = vpop.xlane.xlu0 %762 }
 0x328   : > { %v770_v43 = vadd.f32 %v769_v41, %v763_v42  ;;  %v260_v41 = vrot.slane %v2731_v36, %v3019_v4  ;;  %v2925_v42 = vpack.c.bf16 %v224_v38, %v3036_v7 }
 0x32a   : > { %v771_v44 = vsub.f32 %v770_v43, %v680_v30  ;;  %v256_v43 = vrot.slane %v2731_v36, %v3016_v3  ;;  %vm262_vm10 = vcmp.eq.s32.totalorder %v3009_v2, %v260_v41 }
 0x32c   : > { %v772_v45 = vsub.f32 %v771_v44, %v750_v33  ;;  %v220_v33 = vld [vmem:[%s3029_s24 + $0x10] sm:$0xff]  ;;  %v276_v44 = vrot.slane %v2734_v40, %v3019_v4  ;;  %vm261_vm11 = vcmp.eq.s32.totalorder %v3009_v2, %v256_v43 }
 0x32d   : > { %v2921_v35 = vpack.c.bf16 %v220_v33, %v218_v32 }
 0x32e   : > { %v773_v46 = vsub.f32 0.0, %v772_v45  ;;  %v226_v45 = vld [vmem:[%s3029_s24 + $0x40] sm:$0xf]  ;;  %vm278_vm12 = vcmp.eq.s32.totalorder %v3009_v2, %v276_v44 }
 0x330   : > { %v774_v47 = vmul.f32 1.442695, %v773_v46  ;;  %v2733_v46 = vsel %vm262_vm10, 1.0, %v2969_v1 }
 0x332   : > { %2959 = vpow2.f32 %v774_v47  ;;  %v2737_v47 = vld [vmem:[%s3024_s21 + $0x3] ss:$8 sm:$0x3] }
 0x33c   : > { %v2960_v49 = vpop.eup %2959 }
 0x33d   : > { %v777_v50 = vmul.f32 %v2960_v49, %v776_v48  ;;  %v2732_v48 = vsel %vm261_vm11, 1.0, %v2969_v1  ;;  %v272_v49 = vrot.slane %v2734_v40, %v3016_v3 }
 0x33f   : > { %2872 = vmatmul.mubr.msk.f32.vlgmr.msra.gmra.mrb[2].mxu1 %vm461_vm4, %v777_v50  ;;  %v2736_v50 = vsel %vm278_vm12, 1.0, %v2969_v1  ;;  %vm277_vm14 = vcmp.eq.s32.totalorder %v3009_v2, %v272_v49 }
 0x340   : > { %1034 = vmatprep.mubr.f32.mxu1 %v2969_v1  ;;  %2772 = vmatpush1.msk.msra.mxu1 %vm449_vm1, %v2729_v8 }
 0x341   : > { %2920 = vmatprep.subr.bf16.mxu1 %v2919_v14  ;;  %v2752_v14 = vld [vmem:[%s3024_s21 + $0x10] ss:$8 sm:$0x3] }
 0x412   : > { %v849_v53 = vpop.f32.mrb[2].mxu1 }
 0x413   : > { %v2873_v54 = vpop.f32.mrb[3].mxu1  ;;  %2877 = vmatmul.mubr.msk.f32.vlgmr.msra.gmra.mrb[8].mxu0 %vm461_vm4, %v849_v53 }
 0x414   : > { %2880 = vmatpush3.msk.msra.mxu0 %vm449_vm1, %v1154_v52  ;;  %2881 = vmatprep.mubr.msk.f32.mxu0 %vm2970_vm0, %v2969_v1  ;;  %v288_v54 = vrot.slane %v2737_v47, %v3016_v3 }
 0x415   : > { %2884 = vmatprep.subr.mxu0 %v2969_v1 }
 0x417   : > { %2882 = vmatmul.mubr.msk.f32.vlgmr.msra.gmra.mrb[10].mxu0 %vm461_vm4, %v849_v53 }
 0x418   : > { %2885 = vmatpush3.msk.msra.mxu0 %vm449_vm1, %v230_v55  ;;  %2886 = vmatprep.mubr.msk.f32.mxu0 %vm2970_vm0, %v2969_v1 }
 0x419   : > { %2889 = vmatprep.subr.mxu0 %v2969_v1 }
 0x41b   : > { %2887 = vmatmul.mubr.msk.f32.vlgmr.msra.gmra.mrb[12].mxu0 %vm461_vm4, %v849_v53 }
 0x41c   : > { %2890 = vmatpush3.msk.msra.mxu0 %vm449_vm1, %v1528_v56  ;;  %2891 = vmatprep.mubr.msk.f32.mxu0 %vm2970_vm0, %v2969_v1 }
 0x41d   : > { %2894 = vmatprep.subr.mxu0 %v2969_v1 }
 0x41f   : > { %2892 = vmatmul.mubr.msk.f32.vlgmr.msra.gmra.mrb[14].mxu0 %vm461_vm4, %v849_v53 }
 0x420   : > { %2895 = vmatpush3.msk.msra.mxu0 %vm449_vm1, %v231_v57  ;;  %2896 = vmatprep.mubr.msk.f32.mxu0 %vm2970_vm0, %v2969_v1 }
 0x421   : > { %2899 = vmatprep.subr.mxu0 %v2969_v1 }
 0x423   : > { %2897 = vmatmul.mubr.msk.f32.vlgmr.msra.gmra.mrb[16].mxu0 %vm461_vm4, %v849_v53 }
 0x424   : > { %2900 = vmatpush3.msk.msra.mxu0 %vm449_vm1, %v1902_v58  ;;  %2901 = vmatprep.mubr.msk.f32.mxu0 %vm2970_vm0, %v2969_v1 }
 0x425   : > { %2904 = vmatprep.subr.mxu0 %v2969_v1 }
 0x427   : > { %2902 = vmatmul.mubr.msk.f32.vlgmr.msra.gmra.mrb[18].mxu0 %vm461_vm4, %v849_v53 }
 0x428   : > { %2905 = vmatpush3.msk.msra.mxu0 %vm449_vm1, %v232_v59  ;;  %2906 = vmatprep.mubr.msk.f32.mxu0 %vm2970_vm0, %v2969_v1 }
 0x429   : > { %2909 = vmatprep.subr.mxu0 %v2969_v1 }
 0x42b   : > { %2907 = vmatmul.mubr.msk.f32.vlgmr.msra.gmra.mrb[20].mxu0 %vm461_vm4, %v849_v53 }
 0x42c   : > { %2910 = vmatpush3.msk.msra.mxu0 %vm449_vm1, %v2276_v60  ;;  %2911 = vmatprep.mubr.msk.f32.mxu0 %vm2970_vm0, %v2969_v1 }
 0x42d   : > { %2914 = vmatprep.subr.mxu0 %v2969_v1 }
 0x42f   : > { %2912 = vmatmul.mubr.msk.f32.vlgmr.msra.gmra.mrb[22].mxu0 %vm461_vm4, %v849_v53 }
 0x430   : > { %2915 = vmatpush3.msk.msra.mxu0 %vm449_vm1, %v233_v61  ;;  %2916 = vmatprep.mubr.msk.f32.mxu0 %vm2970_vm0, %v2969_v1  ;;  %vm293_vm0 = vcmp.eq.s32.totalorder %v3009_v2, %v288_v54 }
 0x431   : > { %v2738_v58 = vsel %vm293_vm0, 1.0, %v2969_v1 }
 0x433   : > { %2917 = vmatmul.mubr.msk.f32.vlgmr.msra.gmra.mrb[24].mxu0 %vm461_vm4, %v849_v53  ;;  %v2735_v53 = vsel %vm277_vm14, 1.0, %v2969_v1 }
 0x4e6   : > { %v925_v12 = vpop.f32.mrb[8].mxu0 }
 0x4e7   : > { %929 = vxpose.xlu1.b32.start.end [1/1] (short) (narrow) %v925_v12, 8  ;;  %v2878_v15 = vpop.f32.mrb[9].mxu0 }
 0x4ea   : > { %v1223_v16 = vpop.f32.mrb[10].mxu0 }
 0x4eb   : > { %1041 = vxpose.xlu1.b32.start [1/5] (short) (narrow) %v229_v51, 8  ;;  %1227 = vxpose.xlu0.b32.start.end [1/1] (short) (narrow) %v1223_v16, 8  ;;  %v2883_v17 = vpop.f32.mrb[11].mxu0  ;;  %v292_v51 = vrot.slane %v2737_v47, %v3019_v4  ;;  %v352_v16 = vrot.slane %v2749_v5, %v3016_v3 }
 0x4ed   : > { %vm294_vm15 = vcmp.eq.s32.totalorder %v3009_v2, %v292_v51  ;;  %vm357_vm8 = vcmp.eq.s32.totalorder %v3009_v2, %v352_v16 }
 0x4ee   : > { %v1410_v18 = vpop.f32.mrb[12].mxu0 }
 0x4ef   : > { %1042 = vxpose.xlu1.b32.cont [2/5] (short) (narrow) %v230_v55, 8  ;;  %v2888_v19 = vpop.f32.mrb[13].mxu0  ;;  %v2739_v55 = vsel %vm294_vm15, 1.0, %v2969_v1 }
 0x4f2   : > { %v1597_v20 = vpop.f32.mrb[14].mxu0 }
 0x4f3   : > { %1043 = vxpose.xlu1.b32.cont [3/5] (short) (narrow) %v231_v57, 8  ;;  %v2893_v21 = vpop.f32.mrb[15].mxu0  ;;  %v2743_v57 = vld [vmem:[%s3024_s21 + $0x5] ss:$8 sm:$0x3] }
 0x4f4   : > { %v320_v62 = vrot.slane %v2743_v57, %v3016_v3  ;;  %v368_v21 = vrot.slane %v2752_v14, %v3016_v3 }
 0x4f6   : > { %v1784_v22 = vpop.f32.mrb[16].mxu0  ;;  %vm325_vm3 = vcmp.eq.s32.totalorder %v3009_v2, %v320_v62  ;;  %vm373_vm10 = vcmp.eq.s32.totalorder %v3009_v2, %v368_v21 }
 0x4f7   : > { %1044 = vxpose.xlu1.b32.cont [4/5] (short) (narrow) %v232_v59, 8  ;;  %v2898_v23 = vpop.f32.mrb[17].mxu0  ;;  %v324_v59 = vrot.slane %v2743_v57, %v3019_v4  ;;  %v2744_v8 = vsel %vm325_vm3, 1.0, %v2969_v1 }
 0x4f8   : > { %v2753_v23 = vsel %vm373_vm10, 1.0, %v2969_v1 }
 0x4f9   : > { %vm326_vm2 = vcmp.eq.s32.totalorder %v3009_v2, %v324_v59 }
 0x4fa   : > { %v1971_v24 = vpop.f32.mrb[18].mxu0  ;;  %v2745_v63 = vsel %vm326_vm2, 1.0, %v2969_v1 }
 0x4fb   : > { %1045 = vxpose.xlu1.b32.end [5/5] (short) (narrow) %v233_v61, 8  ;;  %v2903_v25 = vpop.f32.mrb[19].mxu0  ;;  %v2746_v61 = vld [vmem:[%s3024_s21 + $0x6] ss:$8 sm:$0x3] }
 0x4fc   : > { %v340_v0 = vrot.slane %v2746_v61, %v3019_v4  ;;  %v336_v9 = vrot.slane %v2746_v61, %v3016_v3 }
 0x4fe   : > { %v2158_v26 = vpop.f32.mrb[20].mxu0  ;;  %vm342_vm5 = vcmp.eq.s32.totalorder %v3009_v2, %v340_v0  ;;  %vm341_vm6 = vcmp.eq.s32.totalorder %v3009_v2, %v336_v9 }
 0x4ff   : > { %1414 = vxpose.xlu1.b32.start.end [1/1] (short) (narrow) %v1410_v18, 8  ;;  %v2908_v27 = vpop.f32.mrb[21].mxu0  ;;  %v2748_v11 = vsel %vm342_vm5, 1.0, %v2969_v1  ;;  %v2747_v15 = vsel %vm341_vm6, 1.0, %v2969_v1  ;;  %v372_v18 = vrot.slane %v2752_v14, %v3019_v4 }
 0x501   : > { %vm374_vm9 = vcmp.eq.s32.totalorder %v3009_v2, %v372_v18 }
 0x502   : > { %v2345_v28 = vpop.f32.mrb[22].mxu0 }
 0x503   : > { %1601 = vxpose.xlu1.b32.start.end [1/1] (short) (narrow) %v1597_v20, 8  ;;  %v2913_v29 = vpop.f32.mrb[23].mxu0  ;;  %v2750_v20 = vsel %vm357_vm8, 1.0, %v2969_v1 }
 0x506   : > { %v2532_v30 = vpop.f32.mrb[24].mxu0 }
 0x507   : > { %1788 = vxpose.xlu1.b32.start.end [1/1] (short) (narrow) %v1784_v22, 8  ;;  %v2918_v31 = vpop.f32.mrb[25].mxu0  ;;  %v2754_v22 = vsel %vm374_vm9, 1.0, %v2969_v1 }
 0x50b   : > { %1975 = vxpose.xlu1.b32.start.end [1/1] (short) (narrow) %v1971_v24, 8 }
 0x50f   : > { %2162 = vxpose.xlu1.b32.start.end [1/1] (short) (narrow) %v2158_v26, 8 }
 0x513   : > { %2349 = vxpose.xlu1.b32.start.end [1/1] (short) (narrow) %v2345_v28, 8 }
 0x517   : > { %2536 = vxpose.xlu1.b32.start.end [1/1] (short) (narrow) %v2532_v30, 8 }
 0x567   : > { %v945_v39 = vpop.trf.xlu1 }
 0x568   : > { %2773 = vmatmul.mubr.msk.f32.vlgmr.msra.gmra.mrb[4].mxu1 %vm461_vm4, %v945_v39 }
 0x569   : > { %2922 = vmatpush1.bf16.msra.mxu1 %v2921_v35  ;;  %1147 = vmatprep.mubr.f32.mxu1 %v2969_v1 }
 0x56a   : > { %2924 = vmatprep.subr.bf16.mxu1 %v2923_v37 }
 0x56b   : > { %v1057_v7 = vpop.trf.xlu1  ;;  %v1243_v52 = vpop.trf.xlu0 }
 0x56d   : > { %2926 = vmatpush1.bf16.msra.mxu1 %v2925_v42 }
 0x56e   : > { %2774 = vmatprep.subr.msk.mxu1 %vm449_vm1, %v227_v6 }
 0x571   : > { %2775 = vmatpush1.msk.msra.mxu1 %vm449_vm1, %v226_v45 }
 0x572   : > { %2776 = vmatmul.mubr.msk.f32.vlgmr.msra.gmra.mrb[4].mxu1 %vm1073_vm13, %v1057_v7  ;;  %2779 = vmatprep.subr.msk.mxu1 %vm449_vm1, %v2733_v46 }
 0x573   : > { %2780 = vmatpush1.msk.msra.mxu1 %vm449_vm1, %v2732_v48  ;;  %1332 = vmatprep.mubr.f32.mxu1 %v2969_v1 }
 0x574   : > { %2784 = vmatprep.subr.msk.mxu1 %vm449_vm1, %v2736_v50 }
 0x57a   : > { %2781 = vmatmul.mubr.msk.f32.vlgmr.msra.gmra.mrb[4].mxu1 %vm461_vm4, %v1243_v52 }
 0x57b   : > { %2785 = vmatpush1.msk.msra.mxu1 %vm449_vm1, %v2735_v53  ;;  %1519 = vmatprep.mubr.f32.mxu1 %v2969_v1 }
 0x57c   : > { %2789 = vmatprep.subr.msk.mxu1 %vm449_vm1, %v2739_v55 }
 0x57f   : > { %v1430_v56 = vpop.trf.xlu1 }
 0x582   : > { %2786 = vmatmul.mubr.msk.f32.vlgmr.msra.gmra.mrb[4].mxu1 %vm461_vm4, %v1430_v56 }
 0x583   : > { %2790 = vmatpush1.msk.msra.mxu1 %vm449_vm1, %v2738_v58  ;;  %1706 = vmatprep.mubr.f32.mxu1 %v2969_v1  ;;  %v1617_v60 = vpop.trf.xlu1 }
 0x584   : > { %2794 = vmatprep.subr.msk.mxu1 %vm449_vm1, %v3045_v10 }
 0x587   : > { %v1804_v10 = vpop.trf.xlu1 }
 0x58a   : > { %2791 = vmatmul.mubr.msk.f32.vlgmr.msra.gmra.mrb[4].mxu1 %vm461_vm4, %v1617_v60 }
 0x58b   : > { %2795 = vmatpush1.msk.msra.mxu1 %vm449_vm1, %v3052_v13  ;;  %1893 = vmatprep.mubr.f32.mxu1 %v2969_v1  ;;  %v356_v13 = vrot.slane %v2749_v5, %v3019_v4  ;;  %v1991_v12 = vpop.trf.xlu1 }
 0x58c   : > { %2799 = vmatprep.subr.msk.mxu1 %vm449_vm1, %v2745_v63 }
 0x58d   : > { %vm358_vm7 = vcmp.eq.s32.totalorder %v3009_v2, %v356_v13 }
 0x58e   : > { %v2751_v17 = vsel %vm358_vm7, 1.0, %v2969_v1 }
 0x58f   : > { %v2178_v19 = vpop.trf.xlu1 }
 0x592   : > { %2796 = vmatmul.mubr.msk.f32.vlgmr.msra.gmra.mrb[4].mxu1 %vm461_vm4, %v1804_v10 }
 0x593   : > { %2800 = vmatpush1.msk.msra.mxu1 %vm449_vm1, %v2744_v8  ;;  %2080 = vmatprep.mubr.f32.mxu1 %v2969_v1  ;;  %v2365_v4 = vpop.trf.xlu1 }
 0x594   : > { %2804 = vmatprep.subr.msk.mxu1 %vm449_vm1, %v2748_v11 }
 0x597   : > { %v2552_v3 = vpop.trf.xlu1 }
 0x59a   : > { %2801 = vmatmul.mubr.msk.f32.vlgmr.msra.gmra.mrb[4].mxu1 %vm461_vm4, %v1991_v12 }
 0x59b   : > { %2805 = vmatpush1.msk.msra.mxu1 %vm449_vm1, %v2747_v15  ;;  %2267 = vmatprep.mubr.f32.mxu1 %v2969_v1 }
 0x59c   : > { %2809 = vmatprep.subr.msk.mxu1 %vm449_vm1, %v2751_v17 }
 0x5a2   : > { %2806 = vmatmul.mubr.msk.f32.vlgmr.msra.gmra.mrb[4].mxu1 %vm461_vm4, %v2178_v19 }
 0x5a3   : > { %2810 = vmatpush1.msk.msra.mxu1 %vm449_vm1, %v2750_v20  ;;  %2454 = vmatprep.mubr.f32.mxu1 %v2969_v1 }
 0x5a4   : > { %2814 = vmatprep.subr.msk.mxu1 %vm449_vm1, %v2754_v22 }
 0x5aa   : > { %2811 = vmatmul.mubr.msk.f32.vlgmr.msra.gmra.mrb[4].mxu1 %vm461_vm4, %v2365_v4 }
 0x5ab   : > { %2815 = vmatpush1.msk.msra.mxu1 %vm449_vm1, %v2753_v23  ;;  %2641 = vmatprep.mubr.f32.mxu1 %v2969_v1 }
 0x5b2   : > { %2816 = vmatmul.mubr.msk.f32.vlgmr.msra.gmra.mrb[4].mxu1 %vm461_vm4, %v2552_v3 }
 0x685   : > { %v2643_v24 = vpop.f32.mrb[4].mxu1 }
 0x686   : > { %2650 = vst [vmem:[%s217_s14] sm:$0xff] %v2643_v24  ;;  %v2645_v2 = vpop.f32.mrb[5].mxu1 }
 0x687   : > { %2651 = vst [vmem:[%s217_s14 + $0x8] sm:$0xff] %v2645_v2 }
 0x688 PF: > { %s14_s15 = sadd.s32 1, %s2967_s15  }
 0x689   : > { %p11_p4 = scmp.ge.s32.totalorder %s14_s15, 4  }
 0x68b   :  { %13 = sbr.rel (!%p11_p4) target bundleno = 1 (0x1), region = 77 }

</bundles_post_ra>
